<compile_context>
chip_gen: v6e
topology: v6e:2x2x1
jax: 0.10.0
libtpu: 0.0.40
codegen_flags: <defaults>
</compile_context>

<pallas_src>
import math

import jax
import jax.numpy as jnp
from jax import lax
from jax.experimental import pallas as pl
from jax.experimental.pallas import tpu as pltpu


def _pad_to(n, m):
    return ((n + m - 1) // m) * m


def _proj_kernel(x_ref, wt_ref, hs_ref, ht_ref, ptr_ref, es_ref, et_ref):
    """One-shot vertex projection + per-vertex attention-logit terms.

    ptr = x @ [W_pos; W_neg]^T   (V, 2*Dpad), both signs batched, zero-padded
    es[v, k] = ptr_k(v) . head_k[:Dout]   (source term, k in {pos, neg})
    et[v, k] = ptr_k(v) . head_k[Dout:]   (target term)
    """
    ptr = jnp.dot(x_ref[...], wt_ref[...], preferred_element_type=jnp.float32)
    ptr_ref[...] = ptr
    es_ref[...] = jnp.dot(ptr, hs_ref[...], preferred_element_type=jnp.float32)
    et_ref[...] = jnp.dot(ptr, ht_ref[...], preferred_element_type=jnp.float32)


def _edge_kernel(sidx_ref, tidx_ref,        # scalar-prefetch (SMEM), (E_pad,)
                 ptr_ref, es_ref, et_ref,    # VMEM residents (constant block index)
                 ewt_ref,                    # (TE, 2) streamed per-sign edge weights
                 o_ref,                      # (V, Dpad) output, written on last tile
                 acc_ref, norm_ref):         # VMEM scratch accumulators
    e = pl.program_id(0)
    te = ewt_ref.shape[0]
    dpad = o_ref.shape[1]
    base = e * te

    @pl.when(e == 0)
    def _init():
        acc_ref[...] = jnp.zeros_like(acc_ref)
        norm_ref[...] = jnp.zeros_like(norm_ref)

    def body(j, carry):
        s = sidx_ref[base + j]
        t = tidx_ref[base + j]
        # Attention logits for both signs at once: (1, 2) = es[s] + et[t].
        logit = es_ref[pl.ds(s, 1), :] + et_ref[pl.ds(t, 1), :]
        lrelu = jnp.where(logit >= 0.0, logit, 0.2 * logit)      # leaky_relu(0.2)
        # TODO(synk): no running-max before exp (matches the PyTorch module);
        # very large positive logits overflow exactly as in the reference.
        alpha = jnp.exp(lrelu) * ewt_ref[pl.ds(j, 1), :]         # (1, 2); wrong sign is 0
        # Gather the source projection row (both sign halves) and scale each half.
        row = ptr_ref[pl.ds(s, 1), :]                            # (1, 2*Dpad)
        scale = jnp.concatenate(
            [jnp.broadcast_to(alpha[:, 0:1], (1, dpad)),
             jnp.broadcast_to(alpha[:, 1:2], (1, dpad))], axis=1)
        # Segment scatter-add into the target vertex row (unnormalized message + norm).
        acc_ref[pl.ds(t, 1), :] = acc_ref[pl.ds(t, 1), :] + scale * row
        norm_ref[pl.ds(t, 1), :] = norm_ref[pl.ds(t, 1), :] + alpha
        return carry

    lax.fori_loop(0, te, body, 0, unroll=False)

    @pl.when(e == pl.num_programs(0) - 1)
    def _finish():
        norm = norm_ref[...]
        # Vertices with no incoming same-sign edge keep a zero output row.
        denom = jnp.where(norm == 0.0, 1.0, norm)
        inv = pl.reciprocal(denom, approx=False)
        acc = acc_ref[...]
        o_ref[...] = (acc[:, :dpad] * inv[:, 0:1]
                      + acc[:, dpad:] * inv[:, 1:2]).astype(o_ref.dtype)


def graph_attent(x, eidx, ewt, esgn, params, *, te=512):
    """JAX wrapper: one-shot projection kernel + edge-tiled sparse aggregation kernel."""
    V, Din = x.shape
    Dout = params["weight"]["pos"].shape[0]
    E = eidx.shape[1]
    Dpad = _pad_to(Dout, 128)        # lane-dense feature axis; halves split on a vreg boundary
    f32 = jnp.float32
    x = x.astype(f32)

    # --- Parameters, zero-padded so each sign occupies a 128-aligned half.
    w_pad = jnp.zeros((2 * Dpad, Din), f32)
    w_pad = w_pad.at[:Dout].set(params["weight"]["pos"].astype(f32))
    w_pad = w_pad.at[Dpad:Dpad + Dout].set(params["weight"]["neg"].astype(f32))
    hp = params["head"]["pos"].astype(f32)
    hn = params["head"]["neg"].astype(f32)
    hs = jnp.zeros((2 * Dpad, 2), f32)
    hs = hs.at[:Dout, 0].set(hp[:Dout]).at[Dpad:Dpad + Dout, 1].set(hn[:Dout])
    ht = jnp.zeros((2 * Dpad, 2), f32)
    ht = ht.at[:Dout, 0].set(hp[Dout:]).at[Dpad:Dpad + Dout, 1].set(hn[Dout:])

    # --- Stage 1: projection + per-vertex logit scalars (runs once, whole arrays in VMEM).
    # TODO(synk): tile over V rows once V * 2*Dpad no longer fits VMEM.
    ptr, es, et = pl.pallas_call(
        _proj_kernel,
        out_shape=(jax.ShapeDtypeStruct((V, 2 * Dpad), f32),
                   jax.ShapeDtypeStruct((V, 2), f32),
                   jax.ShapeDtypeStruct((V, 2), f32)),
    )(x, w_pad.T, hs, ht)

    # --- Stage 2 inputs: edge indices (SMEM via scalar prefetch) and per-sign
    #     masked weights (sign selection lives entirely in the weight columns).
    sidx = eidx[0].astype(jnp.int32)
    tidx = eidx[1].astype(jnp.int32)
    ewt_both = jnp.stack([ewt * (esgn == 1), ewt * (esgn == -1)], axis=1).astype(f32)

    te = max(8, (min(te, max(E, 8)) // 8) * 8)
    e_pad = _pad_to(max(E, te), te)
    pad = e_pad - E
    if pad:
        sidx = jnp.pad(sidx, (0, pad))                     # padded edges: s = t = 0
        tidx = jnp.pad(tidx, (0, pad))
        ewt_both = jnp.pad(ewt_both, ((0, pad), (0, 0)))   # weight 0 => zero contribution
    grid = (e_pad // te,)

    # --- VMEM budget: derive from footprint, clamp to the device's capacity.
    def _lane(n): return _pad_to(max(n, 1), 128)
    def _sub(n): return _pad_to(max(n, 1), 8)
    row_bytes = 4 * _sub(V)
    resident = row_bytes * (_lane(2 * Dpad) + 2 * _lane(2))     # ptr + es + et (x2 buffers)
    streamed = 4 * _sub(te) * _lane(2)                          # ewt tile (x2 buffers)
    out_bytes = row_bytes * _lane(Dpad)
    scratch = row_bytes * (_lane(2 * Dpad) + _lane(2))          # acc + norm
    needed = 2 * resident + 2 * streamed + 2 * out_bytes + scratch
    try:
        vmem_cap = int(pltpu.get_tpu_info().vmem_capacity_bytes)
    except Exception:                                           # conservative: v7x per-core size
        vmem_cap = 64 * 1024 * 1024
    vmem_limit = int(min(max(2 * needed, 32 * 1024 * 1024), int(0.7 * vmem_cap)))

    cost = pl.CostEstimate(
        flops=int(e_pad * (4 * Dpad + 16) + 4 * V * Dpad),
        transcendentals=int(2 * e_pad),
        bytes_accessed=int(8 * e_pad + 8 * e_pad
                           + 4 * V * (2 * Dpad + 4) + 4 * V * Dpad))

    grid_spec = pltpu.PrefetchScalarGridSpec(
        num_scalar_prefetch=2,
        grid=grid,
        in_specs=[
            pl.BlockSpec((V, 2 * Dpad), lambda e, si, ti: (0, 0)),   # ptr (resident)
            pl.BlockSpec((V, 2), lambda e, si, ti: (0, 0)),          # es  (resident)
            pl.BlockSpec((V, 2), lambda e, si, ti: (0, 0)),          # et  (resident)
            pl.BlockSpec((te, 2), lambda e, si, ti: (e, 0)),         # ewt edge tile (streamed)
        ],
        out_specs=pl.BlockSpec((V, Dpad), lambda e, si, ti: (0, 0)),
        scratch_shapes=[
            pltpu.VMEM((V, 2 * Dpad), f32),   # message accumulator (both signs)
            pltpu.VMEM((V, 2), f32),          # per-vertex normalizer (both signs)
        ],
    )

    out = pl.pallas_call(
        _edge_kernel,
        out_shape=jax.ShapeDtypeStruct((V, Dpad), f32),
        grid_spec=grid_spec,
        compiler_params=pltpu.CompilerParams(
            dimension_semantics=("arbitrary",),   # sequential accumulation over edge tiles
            vmem_limit_bytes=vmem_limit),
        cost_estimate=cost,
    )(sidx, tidx, ptr, es, et, ewt_both)

    return out[:, :Dout]


def init_params(key, in_features, out_features):
    """Parameter init mirroring the module's shapes.

    weight: kaiming_uniform_(a=sqrt(5)) => U(-1/sqrt(in), 1/sqrt(in)).
    head: module uses zeros; use small deterministic random values so the
    leaky_relu / exp attention path is exercised nontrivially.
    """
    k1, k2, k3, k4 = jax.random.split(key, 4)
    bound = 1.0 / math.sqrt(in_features)
    weight = {
        "pos": jax.random.uniform(k1, (out_features, in_features), jnp.float32, -bound, bound),
        "neg": jax.random.uniform(k2, (out_features, in_features), jnp.float32, -bound, bound),
    }
    head = {
        "pos": 0.1 * jax.random.normal(k3, (out_features * 2,), jnp.float32),
        "neg": 0.1 * jax.random.normal(k4, (out_features * 2,), jnp.float32),
    }
    return {"weight": weight, "head": head}


def reference(x, eidx, ewt, esgn, params):
    """Pure-JAX reference matching the PyTorch forward semantics."""
    V = x.shape[0]
    Dout = params["weight"]["pos"].shape[0]
    sidx, tidx = eidx[0], eidx[1]
    res = jnp.zeros((V, Dout), jnp.float32)
    for sgn, sval in (("pos", 1), ("neg", -1)):
        mask = (esgn == sval).astype(jnp.float32)
        ptr = x @ params["weight"][sgn].T
        head = params["head"][sgn]
        logit = ptr[sidx] @ head[:Dout] + ptr[tidx] @ head[Dout:]
        alpha = jnp.exp(jnp.where(logit >= 0.0, logit, 0.2 * logit)) * (ewt * mask)
        norm = jax.ops.segment_sum(alpha, tidx, num_segments=V)
        denom = norm[tidx]
        alpha = alpha / jnp.where(denom == 0.0, 1.0, denom)
        msg = ptr[sidx] * alpha[:, None]
        res = res + jax.ops.segment_sum(msg, tidx, num_segments=V)
    return res


if __name__ == "__main__":
    V, Din, Dout, E = 16, 8, 16, 40   # E=40 with te=16 -> 3 edge tiles incl. a padded one

    key = jax.random.PRNGKey(0)
    kx, ke, kw, ks, kp = jax.random.split(key, 5)
    x = jax.random.normal(kx, (V, Din), jnp.float32)
    eidx = jax.random.randint(ke, (2, E), 0, V, jnp.int32)
    ewt = jax.random.uniform(kw, (E,), jnp.float32, 0.1, 1.0)
    esgn = jnp.where(jax.random.bernoulli(ks, 0.5, (E,)), 1, -1).astype(jnp.int32)
    params = init_params(kp, Din, Dout)

    out = jax.block_until_ready(graph_attent(x, eidx, ewt, esgn, params, te=16))
    ref = reference(x, eidx, ewt, esgn, params)

    assert out.shape == (V, Dout)
    assert jnp.allclose(out, ref, atol=1e-4, rtol=1e-3)
    print("KERNEL_OK")
</pallas_src>

<mosaic_0001>
module attributes {stable_mosaic.version = 11 : i64} {
  func.func @_proj_kernel(%arg0: memref<16x8xf32, #tpu.memory_space<vmem>>, %arg1: memref<8x256xf32, #tpu.memory_space<vmem>>, %arg2: memref<256x2xf32, #tpu.memory_space<vmem>>, %arg3: memref<256x2xf32, #tpu.memory_space<vmem>>, %arg4: memref<16x256xf32, #tpu.memory_space<vmem>>, %arg5: memref<16x2xf32, #tpu.memory_space<vmem>>, %arg6: memref<16x2xf32, #tpu.memory_space<vmem>>) attributes {dimension_semantics = [], scalar_prefetch = 0 : i64, scratch_operands = 0 : i64, tpu.core_type = #tpu.core_type<tc>} {
    %c0 = arith.constant 0 : index
    %c0_0 = arith.constant 0 : index
    %0 = vector.load %arg0[%c0, %c0_0] : memref<16x8xf32, #tpu.memory_space<vmem>>, vector<16x8xf32>
    %c0_1 = arith.constant 0 : index
    %c0_2 = arith.constant 0 : index
    %1 = vector.load %arg1[%c0_1, %c0_2] : memref<8x256xf32, #tpu.memory_space<vmem>>, vector<8x256xf32>
    %cst = arith.constant dense<0.000000e+00> : vector<16x256xf32>
    %2 = tpu.matmul %0, %1, %cst {dimension_numbers = #tpu.dot_dimension_numbers<[1], [0], [0], [1], [0, 0, 1, 1], [], []>} : vector<16x8xf32>, vector<8x256xf32>, vector<16x256xf32> -> vector<16x256xf32>
    %c0_3 = arith.constant 0 : index
    %c0_4 = arith.constant 0 : index
    %3 = vector.load %arg4[%c0_3, %c0_4] : memref<16x256xf32, #tpu.memory_space<vmem>>, vector<16x256xf32>
    tpu.vector_store %arg4[%c0_3, %c0_4], %2 {strides = array<i32>} : memref<16x256xf32, #tpu.memory_space<vmem>>, vector<16x256xf32>,
    %c0_5 = arith.constant 0 : index
    %c0_6 = arith.constant 0 : index
    %4 = vector.load %arg2[%c0_5, %c0_6] : memref<256x2xf32, #tpu.memory_space<vmem>>, vector<256x2xf32>
    %cst_7 = arith.constant dense<0.000000e+00> : vector<16x2xf32>
    %5 = tpu.matmul %2, %4, %cst_7 {dimension_numbers = #tpu.dot_dimension_numbers<[1], [0], [0], [1], [0, 0, 1, 1], [], []>} : vector<16x256xf32>, vector<256x2xf32>, vector<16x2xf32> -> vector<16x2xf32>
    %c0_8 = arith.constant 0 : index
    %c0_9 = arith.constant 0 : index
    %6 = vector.load %arg5[%c0_8, %c0_9] : memref<16x2xf32, #tpu.memory_space<vmem>>, vector<16x2xf32>
    tpu.vector_store %arg5[%c0_8, %c0_9], %5 {strides = array<i32>} : memref<16x2xf32, #tpu.memory_space<vmem>>, vector<16x2xf32>,
    %c0_10 = arith.constant 0 : index
    %c0_11 = arith.constant 0 : index
    %7 = vector.load %arg3[%c0_10, %c0_11] : memref<256x2xf32, #tpu.memory_space<vmem>>, vector<256x2xf32>
    %cst_12 = arith.constant dense<0.000000e+00> : vector<16x2xf32>
    %8 = tpu.matmul %2, %7, %cst_12 {dimension_numbers = #tpu.dot_dimension_numbers<[1], [0], [0], [1], [0, 0, 1, 1], [], []>} : vector<16x256xf32>, vector<256x2xf32>, vector<16x2xf32> -> vector<16x2xf32>
    %c0_13 = arith.constant 0 : index
    %c0_14 = arith.constant 0 : index
    %9 = vector.load %arg6[%c0_13, %c0_14] : memref<16x2xf32, #tpu.memory_space<vmem>>, vector<16x2xf32>
    tpu.vector_store %arg6[%c0_13, %c0_14], %8 {strides = array<i32>} : memref<16x2xf32, #tpu.memory_space<vmem>>, vector<16x2xf32>,
    return
  }
}

</mosaic_0001>

<bundles_post_ra>
// kernel: tpu_custom_call.1
= control target key start
LH: loop header
LB: loop body
LE: loop exit
PB: predicated region body
PF: predicated region fallthrough
CT: control target
= control target key end

     0   :  { %vm25_vm0 = vcmask 64512   ;;  %v460_v3 = vmov 0.0   ;;  %s720_s0 = inlined_call_operand.vmem [shape: f32[16,8], index: 0, kind: input, shape index: {}]   ;;  %s721_s1 = inlined_call_operand.vmem [shape: f32[8,256], index: 1, kind: input, shape index: {}]   ;;  %s722_s2 = inlined_call_operand.vmem [shape: f32[256,2], index: 2, kind: input, shape index: {}]   ;;  %s723_s3 = inlined_call_operand.vmem [shape: f32[256,2], index: 3, kind: input, shape index: {}]   ;;  %s724_s4 = inlined_call_operand.hbm [shape: f32[16,256], index: 4, kind: output, shape index: {0}]   ;;  %s725_s5 = inlined_call_operand.vmem [shape: f32[16,2], index: 5, kind: output, shape index: {1}]   ;;  %s726_s6 = inlined_call_operand.vmem [shape: f32[16,2], index: 6, kind: output, shape index: {2}]  }
   0x1   :  { %v24_v0 = vld [vmem:[%s721_s1 + $0x8] sm:$0xff]  ;;  %v23_v1 = vld [vmem:[%s721_s1] sm:$0xff]  ;;  %96 = vmatprep.mubr.f32.mxu0 %v460_v3  ;;  %v144_v4 = vld [vmem:[%s722_s2 + $0xf8] sm:$0xff] }
   0x2   :  { %v21_v2 = vld [vmem:[%s720_s0] sm:$0xff]  ;;  %62 = vmatprep.subr.mxu0 %v24_v0  ;;  %v254_v5 = vld [vmem:[%s723_s3 + $0xf8] sm:$0xff]  ;;  %358 = vmatprep.subr.mxu1 %v144_v4  ;;  %v143_v8 = vld [vmem:[%s722_s2 + $0xf0] sm:$0xff] }
   0x3   :  { %63 = vmatpush1.msra.mxu0 %v23_v1  ;;  %v128_v6 = vld [vmem:[%s722_s2 + $0x78] sm:$0xff]  ;;  %v253_v9 = vld [vmem:[%s723_s3 + $0xf0] sm:$0xff]  ;;  %v22_v11 = vld [vmem:[%s720_s0 + $0x8] sm:$0xff] }
   0x4   :  { %v238_v7 = vld [vmem:[%s723_s3 + $0x78] sm:$0xff]  ;;  %356 = vmatmul.mubr.msk.f32.vlgmr.msra.gmra.mxu0 %vm25_vm0, %v21_v2  ;;  %396 = vmatprep.subr.mxu0 %v254_v5  ;;  %v127_v10 = vld [vmem:[%s722_s2 + $0x70] sm:$0xff]  ;;  %v142_v12 = vld [vmem:[%s722_s2 + $0xe8] sm:$0xff] }
   0x5   :  { %102 = vmatprep.mubr.f32.mxu0 %v460_v3  ;;  %359 = vmatpush3.msra.mxu1 %v128_v6  ;;  %v237_v13 = vld [vmem:[%s723_s3 + $0x70] sm:$0xff]  ;;  %v126_v14 = vld [vmem:[%s722_s2 + $0x68] sm:$0xff]  ;;  %v141_v16 = vld [vmem:[%s722_s2 + $0xe0] sm:$0xff] }
   0x6   :  { %397 = vmatpush3.msra.mxu0 %v238_v7  ;;  %360 = vmatprep.subr.mxu1 %v143_v8  ;;  %v252_v15 = vld [vmem:[%s723_s3 + $0xe8] sm:$0xff]  ;;  %v125_v18 = vld [vmem:[%s722_s2 + $0x60] sm:$0xff]  ;;  %v140_v20 = vld [vmem:[%s722_s2 + $0xd8] sm:$0xff] }
   0x7   :  { %398 = vmatprep.subr.mxu0 %v253_v9  ;;  %361 = vmatpush3.msra.mxu1 %v127_v10  ;;  %v236_v17 = vld [vmem:[%s723_s3 + $0x68] sm:$0xff]  ;;  %v251_v19 = vld [vmem:[%s723_s3 + $0xe0] sm:$0xff]  ;;  %v124_v22 = vld [vmem:[%s722_s2 + $0x58] sm:$0xff] }
   0x8   :  { %357 = vmatmul.mubr.msk.f32.gmra.mxu0 %vm25_vm0, %v22_v11  ;;  %362 = vmatprep.subr.mxu1 %v142_v12  ;;  %v235_v21 = vld [vmem:[%s723_s3 + $0x60] sm:$0xff]  ;;  %v250_v23 = vld [vmem:[%s723_s3 + $0xd8] sm:$0xff]  ;;  %v139_v24 = vld [vmem:[%s722_s2 + $0xd0] sm:$0xff] }
   0x9   :  { %399 = vmatpush3.msra.mxu0 %v237_v13  ;;  %363 = vmatpush3.msra.mxu1 %v126_v14  ;;  %v234_v25 = vld [vmem:[%s723_s3 + $0x58] sm:$0xff]  ;;  %v123_v26 = vld [vmem:[%s722_s2 + $0x50] sm:$0xff]  ;;  %v138_v28 = vld [vmem:[%s722_s2 + $0xc8] sm:$0xff] }
   0xa   :  { %400 = vmatprep.subr.mxu0 %v252_v15  ;;  %364 = vmatprep.subr.mxu1 %v141_v16  ;;  %v249_v27 = vld [vmem:[%s723_s3 + $0xd0] sm:$0xff]  ;;  %v122_v30 = vld [vmem:[%s722_s2 + $0x48] sm:$0xff]  ;;  %v137_v32 = vld [vmem:[%s722_s2 + $0xc0] sm:$0xff] }
   0xb   :  { %401 = vmatpush3.msra.mxu0 %v236_v17  ;;  %365 = vmatpush3.msra.mxu1 %v125_v18  ;;  %v233_v29 = vld [vmem:[%s723_s3 + $0x50] sm:$0xff]  ;;  %v248_v31 = vld [vmem:[%s723_s3 + $0xc8] sm:$0xff]  ;;  %v121_v34 = vld [vmem:[%s722_s2 + $0x40] sm:$0xff] }
   0xc   :  { %402 = vmatprep.subr.mxu0 %v251_v19  ;;  %366 = vmatprep.subr.mxu1 %v140_v20  ;;  %v232_v33 = vld [vmem:[%s723_s3 + $0x48] sm:$0xff]  ;;  %v247_v35 = vld [vmem:[%s723_s3 + $0xc0] sm:$0xff]  ;;  %v136_v36 = vld [vmem:[%s722_s2 + $0xb8] sm:$0xff] }
   0xd   :  { %403 = vmatpush3.msra.mxu0 %v235_v21  ;;  %367 = vmatpush3.msra.mxu1 %v124_v22  ;;  %v231_v37 = vld [vmem:[%s723_s3 + $0x40] sm:$0xff]  ;;  %v120_v38 = vld [vmem:[%s722_s2 + $0x38] sm:$0xff]  ;;  %v135_v40 = vld [vmem:[%s722_s2 + $0xb0] sm:$0xff] }
   0xe   :  { %404 = vmatprep.subr.mxu0 %v250_v23  ;;  %368 = vmatprep.subr.mxu1 %v139_v24  ;;  %v246_v39 = vld [vmem:[%s723_s3 + $0xb8] sm:$0xff]  ;;  %v119_v42 = vld [vmem:[%s722_s2 + $0x30] sm:$0xff]  ;;  %v134_v44 = vld [vmem:[%s722_s2 + $0xa8] sm:$0xff] }
   0xf   :  { %405 = vmatpush3.msra.mxu0 %v234_v25  ;;  %369 = vmatpush3.msra.mxu1 %v123_v26  ;;  %v230_v41 = vld [vmem:[%s723_s3 + $0x38] sm:$0xff]  ;;  %v245_v43 = vld [vmem:[%s723_s3 + $0xb0] sm:$0xff] }
  0x10   :  { %406 = vmatprep.subr.mxu0 %v249_v27  ;;  %370 = vmatprep.subr.mxu1 %v138_v28 }
  0x11   :  { %407 = vmatpush3.msra.mxu0 %v233_v29  ;;  %371 = vmatpush3.msra.mxu1 %v122_v30 }
  0x12   :  { %408 = vmatprep.subr.mxu0 %v248_v31  ;;  %372 = vmatprep.subr.mxu1 %v137_v32 }
  0x13   :  { %409 = vmatpush3.msra.mxu0 %v232_v33  ;;  %373 = vmatpush3.msra.mxu1 %v121_v34 }
  0x14   :  { %410 = vmatprep.subr.mxu0 %v247_v35  ;;  %374 = vmatprep.subr.mxu1 %v136_v36 }
  0x15   :  { %411 = vmatpush3.msra.mxu0 %v231_v37  ;;  %375 = vmatpush3.msra.mxu1 %v120_v38 }
  0x16   :  { %12 = vsyncpa [#allocation3], 0  ;;  %412 = vmatprep.subr.mxu0 %v246_v39  ;;  %376 = vmatprep.subr.mxu1 %v135_v40  ;;  %v229_v45 = vld [vmem:[%s723_s3 + $0x30] sm:$0xff]  ;;  %v118_v46 = vld [vmem:[%s722_s2 + $0x28] sm:$0xff] }
  0x17   :  { %413 = vmatpush3.msra.mxu0 %v230_v41  ;;  %377 = vmatpush3.msra.mxu1 %v119_v42  ;;  %v244_v47 = vld [vmem:[%s723_s3 + $0xa8] sm:$0xff]  ;;  %v133_v48 = vld [vmem:[%s722_s2 + $0xa0] sm:$0xff]  ;;  %v132_v52 = vld [vmem:[%s722_s2 + $0x98] sm:$0xff] }
  0x18   :  { %414 = vmatprep.subr.mxu0 %v245_v43  ;;  %378 = vmatprep.subr.mxu1 %v134_v44  ;;  %v228_v49 = vld [vmem:[%s723_s3 + $0x28] sm:$0xff]  ;;  %v117_v50 = vld [vmem:[%s722_s2 + $0x20] sm:$0xff]  ;;  %v116_v54 = vld [vmem:[%s722_s2 + $0x18] sm:$0xff] }
  0x19   :  { %415 = vmatpush3.msra.mxu0 %v229_v45  ;;  %379 = vmatpush3.msra.mxu1 %v118_v46  ;;  %v243_v51 = vld [vmem:[%s723_s3 + $0xa0] sm:$0xff]  ;;  %v242_v55 = vld [vmem:[%s723_s3 + $0x98] sm:$0xff]  ;;  %v131_v56 = vld [vmem:[%s722_s2 + $0x90] sm:$0xff] }
  0x1a   :  { %416 = vmatprep.subr.mxu0 %v244_v47  ;;  %380 = vmatprep.subr.mxu1 %v133_v48  ;;  %v227_v53 = vld [vmem:[%s723_s3 + $0x20] sm:$0xff]  ;;  %v226_v57 = vld [vmem:[%s723_s3 + $0x18] sm:$0xff]  ;;  %v115_v58 = vld [vmem:[%s722_s2 + $0x10] sm:$0xff] }
  0x1b   :  { %417 = vmatpush3.msra.mxu0 %v228_v49  ;;  %381 = vmatpush3.msra.mxu1 %v117_v50  ;;  %v241_v59 = vld [vmem:[%s723_s3 + $0x90] sm:$0xff]  ;;  %v130_v61 = vld [vmem:[%s722_s2 + $0x88] sm:$0xff]  ;;  %v129_v1 = vld [vmem:[%s722_s2 + $0x80] sm:$0xff] }
  0x1c   :  { %418 = vmatprep.subr.mxu0 %v243_v51  ;;  %382 = vmatprep.subr.mxu1 %v132_v52  ;;  %v225_v60 = vld [vmem:[%s723_s3 + $0x10] sm:$0xff]  ;;  %v240_v62 = vld [vmem:[%s723_s3 + $0x88] sm:$0xff]  ;;  %v239_v2 = vld [vmem:[%s723_s3 + $0x80] sm:$0xff] }
  0x1d   :  { %419 = vmatpush3.msra.mxu0 %v227_v53  ;;  %383 = vmatpush3.msra.mxu1 %v116_v54  ;;  %v114_v63 = vld [vmem:[%s722_s2 + $0x8] sm:$0xff]  ;;  %v113_v3 = vld [vmem:[%s722_s2] sm:$0xff]  ;;  %s461_s2 = smov [#allocation2]  }
  0x1e   :  { %420 = vmatprep.subr.mxu0 %v242_v55  ;;  %384 = vmatprep.subr.mxu1 %v131_v56  ;;  %v224_v0 = vld [vmem:[%s723_s3 + $0x8] sm:$0xff]  ;;  %v223_v4 = vld [vmem:[%s723_s3] sm:$0xff]  ;;  %s337_s3 = sshll.u32 %s461_s2, 4  ;;  %s338_s3 = int_to_ptr.vmem [resolvable:$true] %s337_s3 }
  0x1f   :  { %421 = vmatpush3.msra.mxu0 %v226_v57  ;;  %385 = vmatpush3.msra.mxu1 %v115_v58  ;;  %s438_s27 = scalar_lea.vmem %s338_s3, 512  ;;  %p443_p1 = scmp.lt.s32.totalorder %s338_s3, %s338_s3 }
  0x20   :  { %422 = vmatprep.subr.mxu0 %v241_v59  ;;  %386 = vmatprep.subr.mxu1 %v130_v61  ;;  %p439_p0 = scmp.ne.s32.totalorder %s338_s3, %s438_s27  ;;  %p444_p2 = scmp.lt.s32.totalorder %s438_s27, %s438_s27 }
  0x21   :  { %423 = vmatpush3.msra.mxu0 %v225_v60  ;;  %387 = vmatpush3.msra.mxu1 %v114_v63 }
  0x22   :  { %424 = vmatprep.subr.mxu0 %v240_v62  ;;  %388 = vmatprep.subr.mxu1 %v129_v1  ;;  %p445_p3 = por %p444_p2, %p443_p1 }
  0x23   :  { %425 = vmatpush3.msra.mxu0 %v224_v0  ;;  %389 = vmatpush3.msra.mxu1 %v113_v3 }
  0x24   :  { %426 = vmatprep.subr.mxu0 %v239_v2  ;;  %p446_p4 = pnand %p445_p3, %p439_p0 }
  0x25   :  { %427 = vmatpush3.msra.mxu0 %v223_v4 }
  0xc4   :  { %v98_v5 = vpop.f32.mrf.mxu0 }
  0xc5   :  { %109 = vst [vmem:[#allocation2] sm:$0xff] %v98_v5 }
  0xc6   :  { %v100_v6 = vpop.f32.mrf.mxu0 }
  0xc7   :  { %110 = vst [vmem:[#allocation2 + $0x8] sm:$0xff] %v100_v6  ;;  %209 = vmatprep.mubr.f32.mxu1 %v100_v6  ;;  %319 = vmatprep.mubr.f32.mxu0 %v100_v6 }
  0xc8   :  { %v104_v7 = vpop.f32.mrf.mxu0  ;;  %210 = vmatmul.mubr.f32.vlgmr.msra.gmra.mxu1 %v98_v5  ;;  %320 = vmatmul.mubr.f32.vlgmr.msra.gmra.mxu0 %v98_v5 }
  0xc9   :  { %111 = vst [vmem:[#allocation2 + $0x10] sm:$0xff] %v104_v7 }
  0xca   :  { %v106_v8 = vpop.f32.mrf.mxu0 }
  0xcb   :  { %112 = vst [vmem:[#allocation2 + $0x18] sm:$0xff] %v106_v8  ;;  %214 = vmatprep.mubr.f32.mxu1 %v106_v8  ;;  %324 = vmatprep.mubr.f32.mxu0 %v106_v8 }
  0xcc   :  { %215 = vmatmul.mubr.f32.gmra.mxu1 %v104_v7  ;;  %325 = vmatmul.mubr.f32.gmra.mxu0 %v104_v7 }
  0xcd   :  { %449 = shalt.err (!%p446_p4)
}
  0xce   :  { %s462_s28 = smov 256   ;;  %s463_s29 = smov 16   ;;  %vm220_vm1 = vcmask 15360  }
  0xcf   :  { %343 = dma.vmem_to_hbm [thread:$0]  %s338_s3, 512, %s724_s4, [#allocation3], %s462_s28, %s462_s28, %s463_s29  }
 0x188   :  { %v390_v9 = vpop.f32.mrf.mxu1  ;;  %v428_v10 = vpop.f32.mrf.mxu0 }
 0x18a   :  { %v391_v11 = vpop.f32.mrf.mxu1  ;;  %v429_v12 = vpop.f32.mrf.mxu0 }
 0x18b   :  { %v392_v13 = vadd.f32 %v391_v11, %v390_v9  ;;  %v430_v14 = vadd.f32 %v429_v12, %v428_v10 }
 0x18c   :  { %v393_v15 = vpop.f32.mrf.mxu1  ;;  %v431_v16 = vpop.f32.mrf.mxu0 }
 0x18d   :  { %221 = vst.msk [vmem:[%s725_s5] sm:$0xff] %vm220_vm1, %v392_v13  ;;  %330 = vst.msk [vmem:[%s726_s6] sm:$0xff] %vm220_vm1, %v430_v14 }
 0x18e   :  { %v394_v17 = vpop.f32.mrf.mxu1  ;;  %v432_v18 = vpop.f32.mrf.mxu0 }
 0x18f   :  { %v395_v19 = vadd.f32 %v394_v17, %v393_v15  ;;  %v433_v20 = vadd.f32 %v432_v18, %v431_v16 }
 0x191   :  { %222 = vst.msk [vmem:[%s725_s5 + $0x8] sm:$0xff] %vm220_vm1, %v395_v19  ;;  %331 = vst.msk [vmem:[%s726_s6 + $0x8] sm:$0xff] %vm220_vm1, %v433_v20 }
 0x192   :  { %458 = dma.done.wait [#allocation3], 512  }
 0x193   :  { %459 = vsyncadd [#allocation3], 4294966784 }
 0x194   :  { %355 = vsyncpa [#allocation3], 1 }

</bundles_post_ra>
